<compile_context>
chip_gen: v5e
topology: v5e:2x2
jax: 0.10.0
libtpu: 0.0.40
codegen_flags: <defaults>
</compile_context>

<pallas_src>
import jax
import jax.numpy as jnp
from jax.experimental import pallas as pl
from jax.experimental.pallas import tpu as pltpu

_LANES = 128


def _round_up(x: int, m: int) -> int:
    return -(-x // m) * m


def _linear_nn_kernel(w_eff_ref, b_eff_ref, w2_ref, b2_ref, x_ref, o_ref):
    """Fused (folded) MLP forward on one lane-dense (block_rows, 128) tile.

    w_eff_ref: (H,)  b_eff_ref: (H,)   SMEM, folded Linear(1,H)∘Linear(H,H) pre-tanh
    w2_ref:    (H,)  b2_ref:    (1,)   SMEM, Linear(H,1)
    x_ref / o_ref: (block_rows, 128)   VMEM
    """
    H = w_eff_ref.shape[0]
    x = x_ref[...]                                        # (rows, 128)

    # Folded layers 0+1: h1_j = tanh(x * w_eff[j] + b_eff[j])  (VPU FMA + EUP tanh)
    # Output layer:      out  = sum_j h1_j * w2[j] + b2
    out = jnp.tanh(x * w_eff_ref[0] + b_eff_ref[0]) * w2_ref[0]
    for j in range(1, H):
        out = out + jnp.tanh(x * w_eff_ref[j] + b_eff_ref[j]) * w2_ref[j]
    o_ref[...] = out + b2_ref[0]                          # unmasked lane-dense store


def linear_nn_forward(x, params, block_rows=2048):
    """Runs the fused LinearNN forward as a tiled, lane-dense Pallas kernel.

    Args:
      x: arbitrary-shaped float32 array (PyTorch forward does x.reshape(-1, 1)).
      params: dict with w0 (1,H), b0 (H,), w1 (H,H) in (in,out) order, b1 (H,),
              w2 (H,1), b2 (1,).
      block_rows: max rows (of 128 lanes) per grid block. 2048*128*4B = 1 MiB
                  per buffer -> ~4 MiB double-buffered I/O, well within scoped
                  VMEM on v5e/v6e/v7x.
    Returns:
      squeeze of the (N, 1) network output (matches torch .squeeze()).
    """
    x_flat = x.reshape(-1).astype(jnp.float32)
    n = x_flat.shape[0]

    # ---- fold Linear(1->H) and the pre-tanh part of Linear(H->H) ----
    w0v = params["w0"].reshape(-1).astype(jnp.float32)    # (H,)
    b0v = params["b0"].reshape(-1).astype(jnp.float32)    # (H,)
    w1m = params["w1"].astype(jnp.float32)                # (H, H), (in, out)
    b1v = params["b1"].reshape(-1).astype(jnp.float32)    # (H,)
    w_eff = w0v @ w1m                                     # (H,)
    b_eff = b0v @ w1m + b1v                               # (H,)
    w2 = params["w2"].reshape(-1).astype(jnp.float32)     # (H,)
    b2 = params["b2"].reshape(-1).astype(jnp.float32)     # (1,)

    # ---- lane-dense tiling: (padded_rows, 128), block = (br, 128) ----
    rows = max(1, -(-n // _LANES))                        # ceil(n / 128)
    rows8 = _round_up(rows, 8)                            # sublane multiple of 8
    # Cap block rows so mid-sized N still gets >= ~4 grid steps (pipelining +
    # v7x 2-TC sharding), but never below 8 rows.
    target = max(8, _round_up(-(-rows8 // 4), 8))
    br = max(8, min(_round_up(block_rows, 8), target))
    padded_rows = _round_up(rows8, br)
    num_blocks = padded_rows // br
    padded_n = padded_rows * _LANES

    if padded_n == n:
        # Fast path: zero-copy reshape, no extra HBM pad/slice passes.
        x2d = x_flat.reshape(padded_rows, _LANES)
    else:
        # TODO(synk): for very large ragged N, mask only the final block's tail
        # in-kernel (scalar-prefetched n) instead of a whole-array pad pass.
        x2d = jnp.pad(x_flat, (0, padded_n - n)).reshape(padded_rows, _LANES)

    smem = pl.BlockSpec(memory_space=pltpu.MemorySpace.SMEM)
    tile = pl.BlockSpec((br, _LANES), lambda i: (i, 0))

    out = pl.pallas_call(
        _linear_nn_kernel,
        out_shape=jax.ShapeDtypeStruct((padded_rows, _LANES), jnp.float32),
        grid=(num_blocks,),
        in_specs=[smem] * 4 + [tile],
        out_specs=tile,
        compiler_params=pltpu.CompilerParams(
            dimension_semantics=("parallel",)),           # v7x: shard N across 2 TCs
        cost_estimate=pl.CostEstimate(
            flops=20 * padded_n,
            transcendentals=5 * padded_n,
            bytes_accessed=8 * padded_n),
    )(w_eff, b_eff, w2, b2, x2d)

    result = out.reshape(-1)
    if padded_n != n:
        result = result[:n]                               # drop padded tail
    # torch .squeeze() on the (N, 1) network output.
    return jnp.squeeze(result.reshape(n, 1))


def init_params(key, num_inputs=1, num_neurons=5):
    """PyTorch-Linear-style uniform init; weights stored as (in, out)."""
    def linear_init(k, fan_in, fan_out):
        kw, kb = jax.random.split(k)
        bound = 1.0 / jnp.sqrt(float(fan_in))
        w = jax.random.uniform(kw, (fan_in, fan_out), jnp.float32,
                               minval=-bound, maxval=bound)
        b = jax.random.uniform(kb, (fan_out,), jnp.float32,
                               minval=-bound, maxval=bound)
        return w, b

    k0, k1, k2 = jax.random.split(key, 3)
    w0, b0 = linear_init(k0, num_inputs, num_neurons)    # Linear(1, 5)
    w1, b1 = linear_init(k1, num_neurons, num_neurons)   # Linear(5, 5)
    w2, b2 = linear_init(k2, num_neurons, 1)             # Linear(5, 1)
    return {"w0": w0, "b0": b0, "w1": w1, "b1": b1, "w2": w2, "b2": b2}


def reference_forward(x, params):
    """Pure-JAX reference (unfused, matching the PyTorch graph) for checks."""
    x2d = x.reshape(-1, 1).astype(jnp.float32)
    h0 = x2d @ params["w0"].reshape(1, -1) + params["b0"]
    h1 = jnp.tanh(h0 @ params["w1"] + params["b1"])
    out = h1 @ params["w2"].reshape(-1, 1) + params["b2"]
    return jnp.squeeze(out)


if __name__ == "__main__":
    key = jax.random.PRNGKey(0)
    kx, kx2, kx3, kp = jax.random.split(key, 4)
    params = init_params(kp, num_inputs=1, num_neurons=5)

    # Small input consistent with the module (x is flattened to (-1, 1)).
    x = jax.random.normal(kx, (8,), dtype=jnp.float32)
    y = jax.block_until_ready(linear_nn_forward(x, params))
    y_ref = reference_forward(x, params)
    assert y.shape == (8,)
    assert jnp.allclose(y, y_ref, atol=1e-5, rtol=1e-5)

    # Multi-block grid, lane-aligned (no-pad fast path).
    x_big = jax.random.normal(kx2, (4096,), dtype=jnp.float32)
    y_big = jax.block_until_ready(linear_nn_forward(x_big, params, block_rows=8))
    y_big_ref = reference_forward(x_big, params)
    assert y_big.shape == (4096,)
    assert jnp.allclose(y_big, y_big_ref, atol=1e-5, rtol=1e-5)

    # Ragged N exercising the padded path + output slice.
    x_rag = jax.random.normal(kx3, (1000,), dtype=jnp.float32)
    y_rag = jax.block_until_ready(linear_nn_forward(x_rag, params))
    y_rag_ref = reference_forward(x_rag, params)
    assert y_rag.shape == (1000,)
    assert jnp.allclose(y_rag, y_rag_ref, atol=1e-5, rtol=1e-5)

    print("KERNEL_OK")
</pallas_src>

<mosaic_0001>
module attributes {stable_mosaic.version = 11 : i64} {
  func.func @_linear_nn_kernel(%arg0: i32, %arg1: memref<5xf32, #tpu.memory_space<smem>>, %arg2: memref<5xf32, #tpu.memory_space<smem>>, %arg3: memref<5xf32, #tpu.memory_space<smem>>, %arg4: memref<1xf32, #tpu.memory_space<smem>>, %arg5: memref<8x128xf32, #tpu.memory_space<vmem>>, %arg6: memref<8x128xf32, #tpu.memory_space<vmem>>) attributes {dimension_semantics = [#tpu.dimension_semantics<parallel>], iteration_bounds = array<i64: 1>, scalar_prefetch = 0 : i64, scratch_operands = 0 : i64, tpu.core_type = #tpu.core_type<tc>, window_params = [{transform_indices = @transform_0, window_bounds = array<i64: 5>}, {transform_indices = @transform_1, window_bounds = array<i64: 5>}, {transform_indices = @transform_2, window_bounds = array<i64: 5>}, {transform_indices = @transform_3, window_bounds = array<i64: 1>}, {transform_indices = @transform_4, window_bounds = array<i64: 8, 128>}, {transform_indices = @transform_5, window_bounds = array<i64: 8, 128>}]} {
    %c0 = arith.constant 0 : index
    %c0_0 = arith.constant 0 : index
    %0 = vector.load %arg5[%c0, %c0_0] : memref<8x128xf32, #tpu.memory_space<vmem>>, vector<8x128xf32>
    %c0_1 = arith.constant 0 : index
    %1 = memref.load %arg1[%c0_1] : memref<5xf32, #tpu.memory_space<smem>>
    %2 = vector.broadcast %1 : f32 to vector<8x128xf32>
    %3 = arith.mulf %0, %2 : vector<8x128xf32>
    %c0_2 = arith.constant 0 : index
    %4 = memref.load %arg2[%c0_2] : memref<5xf32, #tpu.memory_space<smem>>
    %5 = vector.broadcast %4 : f32 to vector<8x128xf32>
    %6 = arith.addf %3, %5 : vector<8x128xf32>
    %7 = math.tanh %6 : vector<8x128xf32>
    %c0_3 = arith.constant 0 : index
    %8 = memref.load %arg3[%c0_3] : memref<5xf32, #tpu.memory_space<smem>>
    %9 = vector.broadcast %8 : f32 to vector<8x128xf32>
    %10 = arith.mulf %7, %9 : vector<8x128xf32>
    %c1 = arith.constant 1 : index
    %11 = memref.load %arg1[%c1] : memref<5xf32, #tpu.memory_space<smem>>
    %12 = vector.broadcast %11 : f32 to vector<8x128xf32>
    %13 = arith.mulf %0, %12 : vector<8x128xf32>
    %c1_4 = arith.constant 1 : index
    %14 = memref.load %arg2[%c1_4] : memref<5xf32, #tpu.memory_space<smem>>
    %15 = vector.broadcast %14 : f32 to vector<8x128xf32>
    %16 = arith.addf %13, %15 : vector<8x128xf32>
    %17 = math.tanh %16 : vector<8x128xf32>
    %c1_5 = arith.constant 1 : index
    %18 = memref.load %arg3[%c1_5] : memref<5xf32, #tpu.memory_space<smem>>
    %19 = vector.broadcast %18 : f32 to vector<8x128xf32>
    %20 = arith.mulf %17, %19 : vector<8x128xf32>
    %21 = arith.addf %10, %20 : vector<8x128xf32>
    %c2 = arith.constant 2 : index
    %22 = memref.load %arg1[%c2] : memref<5xf32, #tpu.memory_space<smem>>
    %23 = vector.broadcast %22 : f32 to vector<8x128xf32>
    %24 = arith.mulf %0, %23 : vector<8x128xf32>
    %c2_6 = arith.constant 2 : index
    %25 = memref.load %arg2[%c2_6] : memref<5xf32, #tpu.memory_space<smem>>
    %26 = vector.broadcast %25 : f32 to vector<8x128xf32>
    %27 = arith.addf %24, %26 : vector<8x128xf32>
    %28 = math.tanh %27 : vector<8x128xf32>
    %c2_7 = arith.constant 2 : index
    %29 = memref.load %arg3[%c2_7] : memref<5xf32, #tpu.memory_space<smem>>
    %30 = vector.broadcast %29 : f32 to vector<8x128xf32>
    %31 = arith.mulf %28, %30 : vector<8x128xf32>
    %32 = arith.addf %21, %31 : vector<8x128xf32>
    %c3 = arith.constant 3 : index
    %33 = memref.load %arg1[%c3] : memref<5xf32, #tpu.memory_space<smem>>
    %34 = vector.broadcast %33 : f32 to vector<8x128xf32>
    %35 = arith.mulf %0, %34 : vector<8x128xf32>
    %c3_8 = arith.constant 3 : index
    %36 = memref.load %arg2[%c3_8] : memref<5xf32, #tpu.memory_space<smem>>
    %37 = vector.broadcast %36 : f32 to vector<8x128xf32>
    %38 = arith.addf %35, %37 : vector<8x128xf32>
    %39 = math.tanh %38 : vector<8x128xf32>
    %c3_9 = arith.constant 3 : index
    %40 = memref.load %arg3[%c3_9] : memref<5xf32, #tpu.memory_space<smem>>
    %41 = vector.broadcast %40 : f32 to vector<8x128xf32>
    %42 = arith.mulf %39, %41 : vector<8x128xf32>
    %43 = arith.addf %32, %42 : vector<8x128xf32>
    %c4 = arith.constant 4 : index
    %44 = memref.load %arg1[%c4] : memref<5xf32, #tpu.memory_space<smem>>
    %45 = vector.broadcast %44 : f32 to vector<8x128xf32>
    %46 = arith.mulf %0, %45 : vector<8x128xf32>
    %c4_10 = arith.constant 4 : index
    %47 = memref.load %arg2[%c4_10] : memref<5xf32, #tpu.memory_space<smem>>
    %48 = vector.broadcast %47 : f32 to vector<8x128xf32>
    %49 = arith.addf %46, %48 : vector<8x128xf32>
    %50 = math.tanh %49 : vector<8x128xf32>
    %c4_11 = arith.constant 4 : index
    %51 = memref.load %arg3[%c4_11] : memref<5xf32, #tpu.memory_space<smem>>
    %52 = vector.broadcast %51 : f32 to vector<8x128xf32>
    %53 = arith.mulf %50, %52 : vector<8x128xf32>
    %54 = arith.addf %43, %53 : vector<8x128xf32>
    %c0_12 = arith.constant 0 : index
    %55 = memref.load %arg4[%c0_12] : memref<1xf32, #tpu.memory_space<smem>>
    %56 = vector.broadcast %55 : f32 to vector<8x128xf32>
    %57 = arith.addf %54, %56 : vector<8x128xf32>
    %c0_13 = arith.constant 0 : index
    %c0_14 = arith.constant 0 : index
    %58 = vector.load %arg6[%c0_13, %c0_14] : memref<8x128xf32, #tpu.memory_space<vmem>>, vector<8x128xf32>
    tpu.vector_store %arg6[%c0_13, %c0_14], %57 {strides = array<i32>} : memref<8x128xf32, #tpu.memory_space<vmem>>, vector<8x128xf32>,
    return
  }
  func.func @transform_0(%arg0: i32) -> i32 {
    %c0_i32 = arith.constant 0 : i32
    %c0_i32_0 = arith.constant 0 : i32
    return %c0_i32 : i32
  }
  func.func @transform_1(%arg0: i32) -> i32 {
    %c0_i32 = arith.constant 0 : i32
    %c0_i32_0 = arith.constant 0 : i32
    return %c0_i32 : i32
  }
  func.func @transform_2(%arg0: i32) -> i32 {
    %c0_i32 = arith.constant 0 : i32
    %c0_i32_0 = arith.constant 0 : i32
    return %c0_i32 : i32
  }
  func.func @transform_3(%arg0: i32) -> i32 {
    %c0_i32 = arith.constant 0 : i32
    %c0_i32_0 = arith.constant 0 : i32
    return %c0_i32 : i32
  }
  func.func @transform_4(%arg0: i32) -> (i32, i32) {
    %c0_i32 = arith.constant 0 : i32
    %c0_i32_0 = arith.constant 0 : i32
    return %arg0, %c0_i32 : i32, i32
  }
  func.func @transform_5(%arg0: i32) -> (i32, i32) {
    %c0_i32 = arith.constant 0 : i32
    %c0_i32_0 = arith.constant 0 : i32
    return %arg0, %c0_i32 : i32, i32
  }
}

</mosaic_0001>

<bundles_post_ra>
// kernel: tpu_custom_call.1
= control target key start
LH: loop header
LB: loop body
LE: loop exit
PB: predicated region body
PF: predicated region fallthrough
CT: control target
= control target key end

     0   :  { %11 = vsyncpa [#allocation6], 0  ;;  %s331_s0 = inlined_call_operand.vmem [shape: f32[5], index: 0, kind: input, shape index: {}]   ;;  %s332_s1 = inlined_call_operand.vmem [shape: f32[5], index: 1, kind: input, shape index: {}]   ;;  %s333_s2 = inlined_call_operand.vmem [shape: f32[5], index: 2, kind: input, shape index: {}]   ;;  %s334_s3 = inlined_call_operand.<no memory space> [shape: f32[1], index: 3, kind: input, shape index: {}]   ;;  %s335_s4 = inlined_call_operand.hbm [shape: f32[8,128], index: 4, kind: input, shape index: {}]   ;;  %s336_s5 = inlined_call_operand.hbm [shape: f32[8,128], index: 5, kind: output, shape index: {}]  }
   0x1   :  { %12 = vsyncpa [#allocation8], 0 }
   0x2   :  { %13 = vsyncpa [#allocation4], 0  ;;  %s29_s20 = sshll.u32 %s332_s1, 4  ;;  %s30_s20 = int_to_ptr.vmem [resolvable:$true] %s29_s20 }
   0x3   :  { %14 = vsyncpa [#allocation5], 0  ;;  %s20_s23 = sshll.u32 %s331_s0, 4  ;;  %s269_s24 = smov [#allocation7]   ;;  %s21_s23 = int_to_ptr.vmem [resolvable:$true] %s20_s23 }
   0x4   :  { %32 = dma.vmem_to_smem %s30_s20, 16, %s269_s24, [#allocation8]  }
   0x5   :  { %s270_s25 = smov [#allocation3]   ;;  %s38_s28 = sshll.u32 %s333_s2, 4  ;;  %s39_s28 = int_to_ptr.vmem [resolvable:$true] %s38_s28 }
   0x6   :  { %23 = dma.vmem_to_smem %s21_s23, 16, %s270_s25, [#allocation6]  }
   0x7   :  { %s49_s1 = sshll.u32 %s335_s4, 4  ;;  %s271_s6 = smov [#allocation9]   ;;  %s50_s1 = int_to_ptr.hbm [resolvable:$true] %s49_s1 }
   0x8   :  { %41 = dma.vmem_to_smem %s39_s28, 16, %s271_s6, [#allocation8]  }
   0x9   :  { %s272_s7 = smov [#allocation10]  }
   0xa   :  { %s51_s8 = sshll.u32 %s272_s7, 4  ;;  %s52_s8 = int_to_ptr.vmem [resolvable:$true] %s51_s8 }
   0xb   :  { %54 = dma.hbm_to_vmem [thread:$0]  %s50_s1, 128, %s52_s8, [#allocation4]  }
   0xc   :  { %261 = dma.done.wait [#allocation6], 16  }
   0xd   :  { %262 = vsyncadd [#allocation6], 4294967280 }
   0xe   :  { %263 = dma.done.wait [#allocation8], 32  }
   0xf   :  { %264 = vsyncadd [#allocation8], 4294967264 }
  0x10   :  { %265 = dma.done.wait [#allocation4], 128  }
  0x11   :  { %266 = vsyncadd [#allocation4], 4294967168 }
  0x12   :  { %71 = sfence }
  0x13   :  { %s73_s0 = sld [smem:[#allocation3]]  ;;  %v72_v0 = vld [vmem:[#allocation10] sm:$0xff]  ;;  %v128_v39 = vstv %s334_s3  ;;  %s273_s23 = smov [#allocation11]  }
  0x14   :  { %s76_s2 = sld [smem:[#allocation7]]  ;;  %s136_s24 = sshll.u32 %s273_s23, 4  ;;  %s137_s24 = int_to_ptr.vmem [resolvable:$true] %s136_s24 }
  0x15   :  { %s150_s9 = sld [smem:[#allocation3 + $0x1]]  ;;  %s138_s27 = sshll.u32 %s336_s5, 4  ;;  %s139_s27 = int_to_ptr.hbm [resolvable:$true] %s138_s27 }
  0x16   :  { %s151_s10 = sld [smem:[#allocation7 + $0x1]] }
  0x17   :  { %s316_s4 = sld [smem:[#allocation9]] }
  0x18   :  { %s153_s11 = sld [smem:[#allocation3 + $0x2]] }
  0x19   :  { %v74_v1 = vstv %s73_s0  ;;  %s154_s12 = sld [smem:[#allocation7 + $0x2]] }
  0x1a   :  { %v75_v2 = vmul.f32 %v74_v1, %v72_v0  ;;  %v77_v3 = vstv %s76_s2  ;;  %s318_s13 = sld [smem:[#allocation9 + $0x1]] }
  0x1b   :  { %v84_v5 = vstv %s150_s9  ;;  %s156_s14 = sld [smem:[#allocation3 + $0x3]] }
  0x1c   :  { %v78_v4 = vadd.f32 %v77_v3, %v75_v2  ;;  %v85_v6 = vmul.f32 %v84_v5, %v72_v0  ;;  %v87_v7 = vstv %s151_s10  ;;  %s157_s15 = sld [smem:[#allocation7 + $0x3]] }
  0x1d   :  { %s320_s16 = sld [smem:[#allocation9 + $0x2]]  ;;  %v81_v14 = vstv %s316_s4 }
  0x1e   :  { %167 = vtanh.f32 %v78_v4  ;;  %v88_v8 = vadd.f32 %v87_v7, %v85_v6  ;;  %v95_v9 = vstv %s153_s11  ;;  %s159_s17 = sld [smem:[#allocation3 + $0x4]] }
  0x1f   :  { %v96_v10 = vmul.f32 %v95_v9, %v72_v0  ;;  %v98_v11 = vstv %s154_s12  ;;  %s160_s18 = sld [smem:[#allocation7 + $0x4]] }
  0x20   :  { %169 = vtanh.f32 %v88_v8  ;;  %s158_s19 = sld [smem:[#allocation9 + $0x3]]  ;;  %v91_v18 = vstv %s318_s13 }
  0x21   :  { %v99_v12 = vadd.f32 %v98_v11, %v96_v10  ;;  %v106_v13 = vstv %s156_s14  ;;  %s161_s20 = sld [smem:[#allocation9 + $0x4]] }
  0x22   :  { %v107_v15 = vmul.f32 %v106_v13, %v72_v0  ;;  %v109_v16 = vstv %s157_s15 }
  0x23   :  { %171 = vtanh.f32 %v99_v12  ;;  %v102_v26 = vstv %s320_s16 }
  0x24   :  { %v168_v17 = vpop.eup %167  ;;  %v110_v19 = vadd.f32 %v109_v16, %v107_v15  ;;  %v117_v20 = vstv %s159_s17 }
  0x25   :  { %v82_v21 = vmul.f32 %v168_v17, %v81_v14  ;;  %v118_v22 = vmul.f32 %v117_v20, %v72_v0  ;;  %v120_v23 = vstv %s160_s18 }
  0x26   :  { %v170_v24 = vpop.eup %169  ;;  %173 = vtanh.f32 %v110_v19  ;;  %v113_v31 = vstv %s158_s19 }
  0x27   :  { %v92_v25 = vmul.f32 %v170_v24, %v91_v18  ;;  %v121_v27 = vadd.f32 %v120_v23, %v118_v22  ;;  %v124_v35 = vstv %s161_s20 }
  0x29   :  { %v172_v28 = vpop.eup %171  ;;  %v93_v29 = vadd.f32 %v92_v25, %v82_v21  ;;  %175 = vtanh.f32 %v121_v27 }
  0x2a   :  { %v103_v30 = vmul.f32 %v172_v28, %v102_v26 }
  0x2c   :  { %v174_v32 = vpop.eup %173  ;;  %v104_v33 = vadd.f32 %v103_v30, %v93_v29 }
  0x2d   :  { %v114_v34 = vmul.f32 %v174_v32, %v113_v31 }
  0x2f   :  { %v176_v36 = vpop.eup %175  ;;  %v115_v37 = vadd.f32 %v114_v34, %v104_v33 }
  0x30   :  { %v125_v38 = vmul.f32 %v176_v36, %v124_v35 }
  0x32   :  { %v126_v40 = vadd.f32 %v125_v38, %v115_v37 }
  0x34   :  { %v129_v41 = vadd.f32 %v128_v39, %v126_v40 }
  0x36   :  { %130 = vst [vmem:[#allocation11] sm:$0xff] %v129_v41 }
  0x37   :  { %141 = dma.vmem_to_hbm [thread:$0]  %s137_s24, 128, %s139_s27, [#allocation5]  }
  0x38   :  { %267 = dma.done.wait [#allocation5], 128  }
  0x39   :  { %268 = vsyncadd [#allocation5], 4294967168 }
  0x3a   :  { %146 = vsyncpa [#allocation4], 1 }
  0x3b   :  { %147 = vsyncpa [#allocation5], 1 }
  0x3c   :  { %148 = vsyncpa [#allocation6], 1 }
  0x3d   :  { %149 = vsyncpa [#allocation8], 1 }

</bundles_post_ra>
